<compile_context>
chip_gen: v7x
topology: tpu7x:2x2x1
jax: 0.10.0
libtpu: 0.0.40
codegen_flags: <defaults>
</compile_context>

<pallas_src>
import functools

import jax
import jax.numpy as jnp
from jax.experimental import pallas as pl
from jax.experimental.pallas import tpu as pltpu


# ------------------------------ chip detection -------------------------------

def _round_up(x, m):
    return ((x + m - 1) // m) * m


def _device_kind():
    try:
        return jax.devices()[0].device_kind.lower()
    except Exception:
        return ""


def _default_use_int8_mxu():
    # v5e/v5p/v6e MXUs have a native int8 mode (~2x bf16 rate, exact int32 acc).
    # v7x has no integer MXU; v2-v4/unknown also fall back to the bf16 path.
    kind = _device_kind()
    return ("v5" in kind) or ("v6" in kind)


def _default_vmem_limit_bytes():
    kind = _device_kind()
    if ("v5" in kind) or ("v6" in kind):
        return 64 * 1024 * 1024       # 128 MiB physical: big tiles / deeper buffering
    if ("v7" in kind) or ("7x" in kind):
        return 40 * 1024 * 1024       # 64 MiB physical: leave headroom
    return None                        # old / unknown generation: compiler default


# ----------------------------- Pallas kernel ---------------------------------

def qlinear_kernel(gid_ref, a_ref, b_ref, sfa_ref, sfbb_ref, o_ref, acc_ref,
                   *, use_int8_mxu):
    """One (tm, tn) output tile, accumulated over the K grid axis.

    gid_ref  : SMEM (nk,) int32   -- precision-group id of each K block
    a_ref    : (tm, tk) int8      -- activation codes (all groups concatenated)
    b_ref    : (tn, tk) int8      -- weight codes (all groups concatenated)
    sfa_ref  : (tm, 3)  f32       -- per-token scales, one column per group
    sfbb_ref : (4, tn)  f32       -- rows 0..2: per-out-channel scales; row 3: bias
    acc_ref  : (tm, tn) f32 VMEM accumulator (resident across the K axis)
    """
    k = pl.program_id(2)

    @pl.when(k == 0)
    def _init():
        acc_ref[...] = jnp.zeros_like(acc_ref)

    if use_int8_mxu:
        # Native int8 MXU path (v5e/v5p/v6e): exact int32 accumulation, no casts.
        part = jax.lax.dot_general(
            a_ref[...], b_ref[...],
            dimension_numbers=(((1,), (1,)), ((), ())),
            preferred_element_type=jnp.int32).astype(jnp.float32)
    else:
        # Portable bf16 MXU path (v7x has no integer MXU).  int8 codes are exact
        # in bf16; products are accumulated in f32 inside the MXU.
        part = jax.lax.dot_general(
            a_ref[...].astype(jnp.bfloat16), b_ref[...].astype(jnp.bfloat16),
            dimension_numbers=(((1,), (1,)), ((), ())),
            preferred_element_type=jnp.float32)

    # Exact scale factoring per precision group:
    #   (a*sfa) @ (b*sfb)^T == (a @ b^T) * sfa * sfb, applied per K block
    # (every K block belongs to exactly one group, so this is linear & exact).
    g = gid_ref[k]
    sfa = jnp.where(g == 0, sfa_ref[:, 0:1],
                    jnp.where(g == 1, sfa_ref[:, 1:2], sfa_ref[:, 2:3]))
    sfb = jnp.where(g == 0, sfbb_ref[0:1, :],
                    jnp.where(g == 1, sfbb_ref[1:2, :], sfbb_ref[2:3, :]))
    acc_ref[...] += part * sfa * sfb

    @pl.when(k == pl.num_programs(2) - 1)
    def _finalize():
        o_ref[...] = (acc_ref[...] + sfbb_ref[3:4, :]).astype(o_ref.dtype)


# ----------------------- one-time weight preparation --------------------------

def qlinear_prepare(BN, BS, BO, SFBN, SFBS, SFBO, bias=None, *, tn=256, tk=None):
    """Hoisted weight-side preprocessing (do this once, not per forward call).

    Pads each precision group's K to a multiple of tk with zero codes (exact),
    concatenates the int8 weight codes along K, and packs the three SFB rows +
    bias into one (4, Np) f32 array.  Also builds the per-K-block group-id table.
    """
    b_groups = (BN, BS, BO)
    sfb_groups = (SFBN, SFBS, SFBO)
    k_orig = tuple(0 if b is None else int(b.shape[1]) for b in b_groups)
    assert any(ko > 0 for ko in k_orig), "all precision groups are empty"
    N = next(int(b.shape[0]) for b, ko in zip(b_groups, k_orig) if ko > 0)

    if tk is None:
        tk = min(512, _round_up(max(k_orig), 128))
    tn = min(tn, _round_up(N, 128))
    Np = _round_up(N, tn)

    b_parts, gid, kpad = [], [], []
    for g, (b_g, ko) in enumerate(zip(b_groups, k_orig)):
        if ko == 0:                       # skip degenerate (empty) groups
            kpad.append(0)
            continue
        kp = _round_up(ko, tk)
        kpad.append(kp)
        b_pad = jnp.zeros((Np, kp), jnp.int8).at[:N, :ko].set(
            jnp.asarray(b_g, jnp.int8))
        b_parts.append(b_pad)
        gid.extend([g] * (kp // tk))

    B_cat = jnp.concatenate(b_parts, axis=1)          # (Np, K_total) int8
    gid = jnp.asarray(gid, jnp.int32)                 # (nk,)

    # Rows 0..2: per-out-channel scales per group; row 3: bias.  Pads stay zero.
    sfbb = jnp.zeros((4, Np), jnp.float32)
    for g, (sfb_g, ko) in enumerate(zip(sfb_groups, k_orig)):
        if ko > 0:
            sfbb = sfbb.at[g, :N].set(jnp.asarray(sfb_g, jnp.float32).reshape(-1))
    if bias is not None:
        sfbb = sfbb.at[3, :N].set(jnp.asarray(bias, jnp.float32).reshape(-1))

    return dict(B_cat=B_cat, SFBB=sfbb, gid=gid, kpad=tuple(kpad),
                k_orig=k_orig, N=N, Np=Np, tn=tn, tk=tk)


# ------------------------------ forward (glue) --------------------------------

def qlinear_forward(x, prep, *, out_dtype=jnp.float32, use_int8_mxu=None, tm=512):
    """Mirrors QLinearLayer.forward.  `x` is the tuple
    (AN, AS, AO, SFAN, SFAS, SFAO, bsz, q_len); `prep` from qlinear_prepare."""
    AN, AS, AO, SFAN, SFAS, SFAO, bsz, q_len = x
    a_groups = (AN, AS, AO)
    sfa_groups = (SFAN, SFAS, SFAO)
    k_orig, kpad = prep["k_orig"], prep["kpad"]
    N, Np, tn, tk = prep["N"], prep["Np"], prep["tn"], prep["tk"]

    if use_int8_mxu is None:
        use_int8_mxu = _default_use_int8_mxu()

    M = next(int(a.shape[0]) for a, ko in zip(a_groups, k_orig) if ko > 0)
    tm = min(tm, _round_up(M, 32))
    Mp = _round_up(M, tm)

    # Pad + concatenate activation code groups along K (zero codes are exact)
    # and pack the three per-token scale columns into one (Mp, 3) array.
    a_parts, sfa_cols = [], []
    for g, (a_g, sfa_g) in enumerate(zip(a_groups, sfa_groups)):
        col = jnp.zeros((Mp, 1), jnp.float32)
        if k_orig[g] > 0:
            a_pad = jnp.zeros((Mp, kpad[g]), jnp.int8).at[:M, :k_orig[g]].set(
                jnp.asarray(a_g, jnp.int8))
            a_parts.append(a_pad)
            col = col.at[:M, :].set(jnp.asarray(sfa_g, jnp.float32).reshape(M, 1))
        sfa_cols.append(col)
    A_cat = jnp.concatenate(a_parts, axis=1)           # (Mp, K_total) int8
    SFA = jnp.concatenate(sfa_cols, axis=1)            # (Mp, 3) f32

    gid = prep["gid"]
    nk = int(gid.shape[0])
    grid = (Mp // tm, Np // tn, nk)                    # K axis last ("arbitrary")

    kernel = functools.partial(qlinear_kernel, use_int8_mxu=bool(use_int8_mxu))

    y = pl.pallas_call(
        kernel,
        out_shape=jax.ShapeDtypeStruct((Mp, Np), out_dtype),
        grid_spec=pltpu.PrefetchScalarGridSpec(
            num_scalar_prefetch=1,
            grid=grid,
            in_specs=[
                pl.BlockSpec((tm, tk), lambda i, j, k, gid_ref: (i, k)),  # A codes
                pl.BlockSpec((tn, tk), lambda i, j, k, gid_ref: (j, k)),  # B codes
                pl.BlockSpec((tm, 3), lambda i, j, k, gid_ref: (i, 0)),   # SFA
                pl.BlockSpec((4, tn), lambda i, j, k, gid_ref: (0, j)),   # SFB+bias
            ],
            out_specs=pl.BlockSpec((tm, tn), lambda i, j, k, gid_ref: (i, j)),
            scratch_shapes=[pltpu.VMEM((tm, tn), jnp.float32)],
        ),
        compiler_params=pltpu.CompilerParams(
            dimension_semantics=("parallel", "parallel", "arbitrary"),
            vmem_limit_bytes=_default_vmem_limit_bytes()),
    )(gid, A_cat, prep["B_cat"], SFA, prep["SFBB"])

    return y[:M, :N].reshape(bsz, q_len, -1)


# --------------------- deterministic synthetic quantization -------------------

def quantize_rows(x, bits):
    """Symmetric per-row quantization -> (int8 codes, f32 per-row scale [rows,1])."""
    qmax = float(2 ** (bits - 1) - 1)
    scale = jnp.max(jnp.abs(x), axis=1, keepdims=True) / qmax
    scale = jnp.where(scale == 0, 1.0, scale)
    q = jnp.clip(jnp.round(x / scale), -qmax, qmax).astype(jnp.int8)
    return q, scale.astype(jnp.float32)


if __name__ == "__main__":
    key = jax.random.PRNGKey(0)
    k_w, k_b, k_x, k_perm = jax.random.split(key, 4)

    # Small shapes consistent with the module.
    bsz, q_len = 2, 8
    in_features, out_features = 32, 32
    p8_num, p6_num = 8, 8
    p4_num = in_features - p8_num - p6_num      # 16
    M = bsz * q_len

    # "Original" nn.Linear parameters (deterministic, synthetic).
    W = jax.random.normal(k_w, (out_features, in_features), jnp.float32) * 0.05
    bias = jax.random.normal(k_b, (out_features,), jnp.float32) * 0.1

    # reorder_index (channel permutation by "sensitivity"), applied to in_features.
    reorder_index = jax.random.permutation(k_perm, in_features)
    W_r = W[:, reorder_index]                                   # (out, in) reordered

    # Dense float activations, reordered the same way, flattened to (M, in).
    x_dense = jax.random.normal(k_x, (bsz, q_len, in_features), jnp.float32)
    A_r = x_dense.reshape(M, in_features)[:, reorder_index]

    # Split reordered features into precision groups: [4-bit | 6-bit | 8-bit].
    sl_n = slice(0, p4_num)
    sl_s = slice(p4_num, p4_num + p6_num)
    sl_o = slice(p4_num + p6_num, in_features)

    # Quantize weights per-output-channel.
    BN, swn = quantize_rows(W_r[:, sl_n], 4)   # (out, K4), (out, 1)
    BS, sws = quantize_rows(W_r[:, sl_s], 6)
    BO, swo = quantize_rows(W_r[:, sl_o], 8)
    SFBN, SFBS, SFBO = swn.T, sws.T, swo.T     # (1, out)

    # Quantize activations per-token.
    AN, SFAN = quantize_rows(A_r[:, sl_n], 4)  # (M, K4), (M, 1)
    AS, SFAS = quantize_rows(A_r[:, sl_s], 6)
    AO, SFAO = quantize_rows(A_r[:, sl_o], 8)

    # One-time weight prep (hoisted out of the forward path), then forward.
    prep = qlinear_prepare(BN, BS, BO, SFBN, SFBS, SFBO, bias)
    x_tuple = (AN, AS, AO, SFAN, SFAS, SFAO, bsz, q_len)

    y = qlinear_forward(x_tuple, prep)              # auto int8 (v5e/v6e) / bf16 (v7x)
    y = jax.block_until_ready(y)

    # Pure-JAX reference of the same dequantized math.
    def deq_mm(a, sa, b, sb):
        return (a.astype(jnp.float32) @ b.astype(jnp.float32).T) * sa * sb

    y_ref = (deq_mm(AN, SFAN, BN, SFBN)
             + deq_mm(AS, SFAS, BS, SFBS)
             + deq_mm(AO, SFAO, BO, SFBO)
             + bias[None, :]).reshape(bsz, q_len, out_features)

    assert y.shape == (bsz, q_len, out_features)
    assert jnp.allclose(y, y_ref, atol=1e-4, rtol=1e-4), "mismatch vs reference"

    # Also exercise the portable bf16-MXU path + bf16 output (valid on every gen).
    y_bf16 = jax.block_until_ready(
        qlinear_forward(x_tuple, prep, out_dtype=jnp.bfloat16, use_int8_mxu=False))
    assert jnp.allclose(y_bf16.astype(jnp.float32), y_ref, atol=2e-2, rtol=2e-2), \
        "bf16-path mismatch vs reference"

    print("KERNEL_OK")
</pallas_src>

<mosaic_0001>
module attributes {stable_mosaic.version = 11 : i64} {
  func.func @qlinear_kernel(%arg0: i32, %arg1: i32, %arg2: i32, %arg3: memref<3xi32, #tpu.memory_space<smem>>, %arg4: memref<32x128xi8, #tpu.memory_space<vmem>>, %arg5: memref<128x128xi8, #tpu.memory_space<vmem>>, %arg6: memref<32x3xf32, #tpu.memory_space<vmem>>, %arg7: memref<4x128xf32, #tpu.memory_space<vmem>>, %arg8: memref<32x128xf32, #tpu.memory_space<vmem>>, %arg9: memref<32x128xf32, #tpu.memory_space<vmem>>) attributes {dimension_semantics = [#tpu.dimension_semantics<parallel>, #tpu.dimension_semantics<parallel>, #tpu.dimension_semantics<arbitrary>], iteration_bounds = array<i64: 1, 1, 3>, scalar_prefetch = 1 : i64, scratch_operands = 1 : i64, tpu.core_type = #tpu.core_type<tc>, window_params = [{transform_indices = @transform_0, window_bounds = array<i64: 32, 128>}, {transform_indices = @transform_1, window_bounds = array<i64: 128, 128>}, {transform_indices = @transform_2, window_bounds = array<i64: 32, 3>}, {transform_indices = @transform_3, window_bounds = array<i64: 4, 128>}, {transform_indices = @transform_4, window_bounds = array<i64: 32, 128>}]} {
    %c0_i32 = arith.constant 0 : i32
    %0 = arith.cmpi eq, %arg2, %c0_i32 : i32
    %1 = arith.extui %0 : i1 to i32
    %c0_i32_0 = arith.constant 0 : i32
    %2 = arith.cmpi ne, %1, %c0_i32_0 : i32
    scf.if %2 {
      %cst_22 = arith.constant 0.000000e+00 : f32
      %34 = vector.broadcast %cst_22 : f32 to vector<32x128xf32>
      %c0_23 = arith.constant 0 : index
      %c0_24 = arith.constant 0 : index
      %35 = vector.load %arg9[%c0_23, %c0_24] : memref<32x128xf32, #tpu.memory_space<vmem>>, vector<32x128xf32>
      tpu.vector_store %arg9[%c0_23, %c0_24], %34 {strides = array<i32>} : memref<32x128xf32, #tpu.memory_space<vmem>>, vector<32x128xf32>,
    } else {
    }
    %c0 = arith.constant 0 : index
    %c0_1 = arith.constant 0 : index
    %3 = vector.load %arg4[%c0, %c0_1] : memref<32x128xi8, #tpu.memory_space<vmem>>, vector<32x128xi8>
    %4 = arith.sitofp %3 : vector<32x128xi8> to vector<32x128xbf16>
    %c0_2 = arith.constant 0 : index
    %c0_3 = arith.constant 0 : index
    %5 = vector.load %arg5[%c0_2, %c0_3] : memref<128x128xi8, #tpu.memory_space<vmem>>, vector<128x128xi8>
    %6 = arith.sitofp %5 : vector<128x128xi8> to vector<128x128xbf16>
    %cst = arith.constant dense<0.000000e+00> : vector<32x128xf32>
    %7 = tpu.matmul %4, %6, %cst {dimension_numbers = #tpu.dot_dimension_numbers<[1], [1], [0], [0], [0, 0, 1, 0], [], []>} : vector<32x128xbf16>, vector<128x128xbf16>, vector<32x128xf32> -> vector<32x128xf32>
    %8 = arith.index_cast %arg2 : i32 to index
    %9 = memref.load %arg3[%8] : memref<3xi32, #tpu.memory_space<smem>>
    %c0_i32_4 = arith.constant 0 : i32
    %10 = arith.cmpi eq, %9, %c0_i32_4 : i32
    %c0_5 = arith.constant 0 : index
    %c0_6 = arith.constant 0 : index
    %11 = vector.load %arg6[%c0_5, %c0_6] : memref<32x3xf32, #tpu.memory_space<vmem>>, vector<32x1xf32>
    %c1_i32 = arith.constant 1 : i32
    %12 = arith.cmpi eq, %9, %c1_i32 : i32
    %c0_7 = arith.constant 0 : index
    %c1 = arith.constant 1 : index
    %13 = vector.load %arg6[%c0_7, %c1] : memref<32x3xf32, #tpu.memory_space<vmem>>, vector<32x1xf32>
    %c0_8 = arith.constant 0 : index
    %c2 = arith.constant 2 : index
    %14 = vector.load %arg6[%c0_8, %c2] : memref<32x3xf32, #tpu.memory_space<vmem>>, vector<32x1xf32>
    %15 = arith.select %12, %13, %14 : vector<32x1xf32>
    %16 = arith.select %10, %11, %15 : vector<32x1xf32>
    %c0_i32_9 = arith.constant 0 : i32
    %17 = arith.cmpi eq, %9, %c0_i32_9 : i32
    %c0_10 = arith.constant 0 : index
    %c0_11 = arith.constant 0 : index
    %18 = vector.load %arg7[%c0_10, %c0_11] : memref<4x128xf32, #tpu.memory_space<vmem>>, vector<1x128xf32>
    %c1_i32_12 = arith.constant 1 : i32
    %19 = arith.cmpi eq, %9, %c1_i32_12 : i32
    %c1_13 = arith.constant 1 : index
    %c0_14 = arith.constant 0 : index
    %20 = vector.load %arg7[%c1_13, %c0_14] : memref<4x128xf32, #tpu.memory_space<vmem>>, vector<1x128xf32>
    %c2_15 = arith.constant 2 : index
    %c0_16 = arith.constant 0 : index
    %21 = vector.load %arg7[%c2_15, %c0_16] : memref<4x128xf32, #tpu.memory_space<vmem>>, vector<1x128xf32>
    %22 = arith.select %19, %20, %21 : vector<1x128xf32>
    %23 = arith.select %17, %18, %22 : vector<1x128xf32>
    %c0_17 = arith.constant 0 : index
    %c0_18 = arith.constant 0 : index
    %24 = vector.load %arg9[%c0_17, %c0_18] : memref<32x128xf32, #tpu.memory_space<vmem>>, vector<32x128xf32>
    %25 = vector.broadcast %16 : vector<32x1xf32> to vector<32x128xf32>
    %26 = arith.mulf %7, %25 : vector<32x128xf32>
    %27 = vector.broadcast %23 : vector<1x128xf32> to vector<32x128xf32>
    %28 = arith.mulf %26, %27 : vector<32x128xf32>
    %29 = arith.addf %24, %28 : vector<32x128xf32>
    %c0_19 = arith.constant 0 : index
    %c0_20 = arith.constant 0 : index
    %30 = vector.load %arg9[%c0_19, %c0_20] : memref<32x128xf32, #tpu.memory_space<vmem>>, vector<32x128xf32>
    tpu.vector_store %arg9[%c0_19, %c0_20], %29 {strides = array<i32>} : memref<32x128xf32, #tpu.memory_space<vmem>>, vector<32x128xf32>,
    %c2_i32 = arith.constant 2 : i32
    %31 = arith.cmpi eq, %arg2, %c2_i32 : i32
    %32 = arith.extui %31 : i1 to i32
    %c0_i32_21 = arith.constant 0 : i32
    %33 = arith.cmpi ne, %32, %c0_i32_21 : i32
    scf.if %33 {
      %c0_22 = arith.constant 0 : index
      %c0_23 = arith.constant 0 : index
      %34 = vector.load %arg9[%c0_22, %c0_23] : memref<32x128xf32, #tpu.memory_space<vmem>>, vector<32x128xf32>
      %c3 = arith.constant 3 : index
      %c0_24 = arith.constant 0 : index
      %35 = vector.load %arg7[%c3, %c0_24] : memref<4x128xf32, #tpu.memory_space<vmem>>, vector<1x128xf32>
      %36 = vector.broadcast %35 : vector<1x128xf32> to vector<32x128xf32>
      %37 = arith.addf %34, %36 : vector<32x128xf32>
      %c0_25 = arith.constant 0 : index
      %c0_26 = arith.constant 0 : index
      %38 = vector.load %arg8[%c0_25, %c0_26] : memref<32x128xf32, #tpu.memory_space<vmem>>, vector<32x128xf32>
      tpu.vector_store %arg8[%c0_25, %c0_26], %37 {strides = array<i32>} : memref<32x128xf32, #tpu.memory_space<vmem>>, vector<32x128xf32>,
    } else {
    }
    return
  }
  func.func @transform_0(%arg0: i32, %arg1: i32, %arg2: i32, %arg3: memref<3xi32, #tpu.memory_space<smem>>) -> (i32, i32) {
    %c0_i32 = arith.constant 0 : i32
    return %arg0, %arg2 : i32, i32
  }
  func.func @transform_1(%arg0: i32, %arg1: i32, %arg2: i32, %arg3: memref<3xi32, #tpu.memory_space<smem>>) -> (i32, i32) {
    %c0_i32 = arith.constant 0 : i32
    return %arg1, %arg2 : i32, i32
  }
  func.func @transform_2(%arg0: i32, %arg1: i32, %arg2: i32, %arg3: memref<3xi32, #tpu.memory_space<smem>>) -> (i32, i32) {
    %c0_i32 = arith.constant 0 : i32
    %c0_i32_0 = arith.constant 0 : i32
    return %arg0, %c0_i32 : i32, i32
  }
  func.func @transform_3(%arg0: i32, %arg1: i32, %arg2: i32, %arg3: memref<3xi32, #tpu.memory_space<smem>>) -> (i32, i32) {
    %c0_i32 = arith.constant 0 : i32
    %c0_i32_0 = arith.constant 0 : i32
    return %c0_i32, %arg1 : i32, i32
  }
  func.func @transform_4(%arg0: i32, %arg1: i32, %arg2: i32, %arg3: memref<3xi32, #tpu.memory_space<smem>>) -> (i32, i32) {
    %c0_i32 = arith.constant 0 : i32
    return %arg0, %arg1 : i32, i32
  }
}

</mosaic_0001>

<bundles_post_ra>
// kernel: tpu_custom_call.1
= control target key start
LH: loop header
LB: loop body
LE: loop exit
PB: predicated region body
PF: predicated region fallthrough
CT: control target
= control target key end

     0   :  { %s1173_s0 = inlined_call_operand.vmem [shape: s32[3], index: 0, kind: input, shape index: {}]   ;;  %s1174_s1 = inlined_call_operand.vmem [shape: s8[32,384], index: 1, kind: input, shape index: {}]   ;;  %s1175_s2 = inlined_call_operand.hbm [shape: s8[128,384], index: 2, kind: input, shape index: {}]   ;;  %s1176_s3 = inlined_call_operand.vmem [shape: f32[32,3], index: 3, kind: input, shape index: {}]   ;;  %s1177_s4 = inlined_call_operand.vmem [shape: f32[4,128], index: 4, kind: input, shape index: {}]   ;;  %s1178_s5 = inlined_call_operand.hbm [shape: f32[32,128], index: 5, kind: output, shape index: {}]  }
   0x1   :  { %s10_s20 = sshll.u32 %s1173_s0, 4  ;;  %s11_s20 = int_to_ptr.vmem [resolvable:$true] %s10_s20 }
   0x2   :  { %s758_s21 = scalar_lea.vmem %s11_s20, 16  ;;  %p763_p1 = scmp.lt.s32.totalorder %s11_s20, %s11_s20 }
   0x3   :  { %p759_p0 = scmp.ne.s32.totalorder %s11_s20, %s758_s21  ;;  %p764_p2 = scmp.lt.s32.totalorder %s758_s21, %s758_s21 }
   0x5   :  { %p765_p3 = por %p764_p2, %p763_p1 }
   0x7   :  { %p766_p4 = pnand %p765_p3, %p759_p0 }
   0x9   :  { %769 = shalt.err (!%p766_p4)  }
   0xa   :  { %s884_s22 = smov [#allocation4]  }
   0xb   :  { %13 = dma.vmem_to_smem %s11_s20, 16, %s884_s22, [#allocation3] }
   0xc   :  { %850 = dma.done.wait [#allocation3], 16 }
   0xd   :  { %851 = vsyncadd [#allocation3], 4294967280 }
   0xe   :  { %15 = sfence }
   0xf   :  { %16 = vsyncpa [#allocation6], 0 }
  0x10   :  { %18 = vsyncpa [#allocation6 + $0x1], 0 }
  0x11   :  { %19 = vsyncpa [#allocation7], 0  ;;  %s928_s23 = smov 0   ;;  %s930_s24 = smov 0  }
  0x12   :  { %s932_s0 = smov 0   ;;  %s934_s25 = smov 0  }
  0x13   :  { %s936_s26 = smov 0   ;;  %s938_s27 = smov 0  }
  0x14 LB: > { %s638_s28 = sadd.s32 4294967295, %s882_s27   ;;  %s37_s29 = sadd.s32 1, %s878_s26  ;;  %s882_s27 = sphi %s938_s27, %s25_s27   ;;  %s878_s26 = sphi %s936_s26, %s1192_s26   ;;  %s874_s25 = sphi %s934_s25, %s1191_s25   ;;  %s870_s0 = sphi %s932_s0, %s1190_s0   ;;  %s866_s24 = sphi %s930_s24, %s1189_s24   ;;  %s862_s23 = sphi %s928_s23, %s1188_s23  }
  0x15   : > { %p38_p5 = scmp.ge.s32.totalorder %s37_s29, 3  ;;  %s81_s30 = sadd.s32 1, %s870_s0 }
  0x16   : > { %p88_p6 = scmp.ne.s32.totalorder %s870_s0, %s866_s24  ;;  %p89_p7 = scmp.eq.s32.totalorder %s882_s27, 0 }
  0x17   : > { %s1194_s29 = smov (%p38_p5, %s37_s29), 0  ;;  %p94_p9 = scmp.ne.s32.totalorder %s866_s24, %s862_s23 }
  0x18   : > { %p964_p8 = por %p89_p7, %p88_p6  ;;  %s77_s7 = ssub.s32 %s878_s26, %s1194_s29 }
  0x19   : > { %p95_p10 = scmp.eq.s32.totalorder %s638_s28, 0  ;;  %p79_p11 = scmp.eq.s32.totalorder %s77_s7, 0 }
  0x1a   : > { %p695_p13 = scmp.lt.s32.totalorder %s882_s27, 3  ;;  %s225_s10 = sand.u32 1, %s870_s0  }
  0x1b   : > { %p973_p12 = por %p95_p10, %p94_p9  ;;  %s644_s11 = sshll.u32 %s878_s26, 7 }
  0x1c   : > { %s979_s9 = scalar_select %p79_p11, %s870_s0, %s81_s30  }
  0x1d   : > { %s643_s12 = sshll.u32 %s225_s10, 5  ;;  %s986_s15 = scalar_lea.hbm %s1175_s2, %s644_s11 }
  0x1e   : > { %s229_s16 = scalar_lea.vmem [#allocation5], %s643_s12  ;;  %p990_p0 = pnand %p695_p13, %p964_p8 }
  0x1f   : > { %s238_s17 = sshll.u32 %s229_s16, 4  ;;  %s997_s19 = scalar_lea.sflag [#allocation6], %s225_s10  ;;  %s994_s17 = int_to_ptr.vmem [resolvable:$true] %s238_s17 }
  0x20   : > { %s770_s20 = scalar_lea.hbm %s986_s15, 512  ;;  %p772_p3 = pneg %p990_p0 }
  0x21   : > { %p771_p2 = scmp.ne.s32.totalorder %s986_s15, %s770_s20  ;;  %s775_s23 = scalar_lea.hbm %s1175_s2, 1536 }
  0x22   : > { %p776_p6 = scmp.lt.u32.totalorder %s986_s15, %s1175_s2  ;;  %p777_p7 = scmp.lt.u32.totalorder %s775_s23, %s770_s20 }
  0x23   : > { %p773_p4 = pnand %p772_p3, %p771_p2  ;;  %p779_p9 = scmp.lt.u32.totalorder %s770_s20, %s986_s15 }
  0x24   : > { %p778_p8 = por %p777_p7, %p776_p6 }
  0x25   : > { %p774_p5 = pneg %p773_p4 }
  0x26   : > { %p780_p10 = por %p779_p9, %p778_p8 }
  0x28   : > { %p781_p11 = pnand %p780_p10, %p774_p5 }
  0x2a   : > { %784 = shalt.err (!%p781_p11)
}
  0x2b   : > { %s785_s7 = scalar_lea.vmem %s994_s17, 512  ;;  %s885_s10 = smov [#allocation5]  }
  0x2c   : > { %p786_p13 = scmp.ne.s32.totalorder %s994_s17, %s785_s7  ;;  %s790_s11 = sshll.u32 %s885_s10, 4  ;;  %s791_s11 = int_to_ptr.vmem [resolvable:$false] %s790_s11 }
  0x2d   : > { %s792_s12 = scalar_lea.vmem %s791_s11, 1024  ;;  %p793_p1 = scmp.lt.s32.totalorder %s994_s17, %s791_s11 }
  0x2e   : > { %p788_p2 = pnand %p786_p13, %p772_p3  ;;  %p794_p6 = scmp.lt.s32.totalorder %s792_s12, %s785_s7 }
  0x30   : > { %p789_p4 = pneg %p788_p2  ;;  %p795_p7 = por %p794_p6, %p793_p1 }
  0x32   : > { %p796_p8 = pnand %p795_p7, %p789_p4 }
  0x34   : > { %799 = shalt.err (!%p796_p8)
}
  0x35   : > { %s886_s13 = smov 384   ;;  %s887_s14 = smov 128  }
  0x36   : > { %s888_s16 = smov 8   ;;  %p246_p3 = scmp.lt.s32.totalorder %s882_s27, 4 }
  0x37   : > { %694 = dma.hbm_to_vmem [thread:$0]  (!%p990_p0), %s986_s15, 512, %s994_s17, %s997_s19, %s886_s13, %s887_s14, %s888_s16  }
  0x38   : > { %p1182_p5 = scmp.ge.s32.totalorder %s882_s27, 1 }
  0x3a   : > { %p247_p9 = pnand %p1182_p5, %p246_p3 }
  0x3b   : > { %s252_s20 = sand.u32 (!%p247_p9), 1, %s866_s24  }
  0x3c   : > { %250 = sbr.rel (%p247_p9) target bundleno = 490 (0x1ea), region = 36  ;;  %s646_s21 = sshll.u32 (!%p247_p9), %s252_s20, 5 }
  0x3d   : > { %s253_s22 = scalar_lea.sflag (!%p247_p9), [#allocation6], %s252_s20  ;;  %s1029_s23 = scalar_lea.vmem (!%p247_p9), [#allocation5], %s646_s21 }
  0x43   : > { %853 = dma.done.wait (%p973_p12), %s253_s22, 512  }
  0x44   : > { %855 = vsyncadd (%p973_p12), %s253_s22, 4294966784  ;;  %p295_p1 = scmp.lt.s32.totalorder %s874_s25, 2  ;;  %p648_p0 = scmp.ne.s32.totalorder %s874_s25, 0 }
  0x45   : > { %v889_v0 = vmov (!%p648_p0), 0.0  }
  0x46   : > { %s296_s15 = scalar_select %p295_p1, %s874_s25, 2 }
  0x47   : > { %317 = sbr.rel (%p648_p0) target bundleno = 78 (0x4e), region = 44  ;;  %318 = vst [vmem:[#allocation2] sm:$0xff] (!%p648_p0), %v889_v0  ;;  %319 = vst [vmem:[#allocation2 + $0x8] sm:$0xff] (!%p648_p0), %v889_v0 }
  0x48   : > { %s647_s17 = sshll.u32 %s296_s15, 3  ;;  %320 = vst [vmem:[#allocation2 + $0x10] sm:$0xff] (!%p648_p0), %v889_v0  ;;  %321 = vst [vmem:[#allocation2 + $0x18] sm:$0xff] (!%p648_p0), %v889_v0 }
  0x49   : > { %s300_s30 = scalar_lea.vmem %s1174_s1, %s647_s17 }
  0x4e PF: > { %v1044_v1 = vld [vmem:[%s1176_s3] sm:$0xff]  ;;  %v1049_v2 = vld [vmem:[%s1176_s3 + $0x10] sm:$0xff]  ;;  %s890_s11 = smov 127   ;;  %v1059_v4 = vld [vmem:[%s1176_s3 + $0x8] sm:$0xff]  ;;  %s386_s20 = sld [smem:[#allocation4 + %s874_s25]]  ;;  %v891_v20 = vmov 0   ;;  %v472_v45 = vlaneseq }
  0x4f   : > { %400 = vrot.lane.b32.xlu0 %v1044_v1, %s890_s11  ;;  %404 = vrot.lane.b32.xlu1 %v1049_v2, %s890_s11  ;;  %v325_v3 = vld [vmem:[%s1029_s23] sm:$0xff]  ;;  %v1064_v5 = vld [vmem:[%s1176_s3 + $0x18] sm:$0xff]  ;;  %v445_v61 = vld [vmem:[#allocation2 + $0x8] sm:$0xff]  ;;  %p649_p11 = scmp.ne.s32.totalorder %s874_s25, 2 }
  0x50   : > { %v329_v6 = vunpack.c.l.s8.bf16 %v325_v3  ;;  %v330_v7 = vunpack.c.h.s8.bf16 %v325_v3  ;;  %v322_v8 = vld [vmem:[%s300_s30] sm:$0xff]  ;;  %v326_v10 = vld [vmem:[%s1029_s23 + $0x8] sm:$0xff]  ;;  %v327_v13 = vld [vmem:[%s1029_s23 + $0x10] sm:$0xff]  ;;  %756 = vset.pattern.permute.xlu0 %v891_v20  ;;  %757 = vset.pattern.permute.xlu1 %v891_v20  ;;  %v473_v48 = vshrl.u32 %v472_v45, 7 }
  0x51   : > { %v323_v9 = vunpack.c.l.s8.bf16 %v322_v8  ;;  %v331_v11 = vunpack.c.l.s8.bf16 %v326_v10  ;;  %v332_v12 = vunpack.c.h.s8.bf16 %v326_v10  ;;  %v333_v14 = vunpack.c.l.s8.bf16 %v327_v13  ;;  %v328_v16 = vld [vmem:[%s1029_s23 + $0x18] sm:$0xff]  ;;  %v440_v46 = vld [vmem:[%s1177_s4 + $0x1] sm:$0x1]  ;;  %v441_v47 = vld [vmem:[%s1177_s4 + $0x2] sm:$0x1] }
  0x52   : > { %665 = vmatprep.subr.bf16.mxu0 %v329_v6  ;;  %v334_v15 = vunpack.c.h.s8.bf16 %v327_v13  ;;  %v335_v17 = vunpack.c.l.s8.bf16 %v328_v16  ;;  %v336_v18 = vunpack.c.h.s8.bf16 %v328_v16  ;;  %v324_v19 = vunpack.c.h.s8.bf16 %v322_v8  ;;  %v439_v49 = vld [vmem:[%s1177_s4] sm:$0x1] }
  0x53   : > { %402 = vrot.lane.b32.xlu0 %v1059_v4, %s890_s11  ;;  %406 = vrot.lane.b32.xlu1 %v1064_v5, %s890_s11  ;;  %v474_v51 = vsub.s32 0, %v473_v48  ;;  %v444_v56 = vld [vmem:[#allocation2] sm:$0xff] }
  0x54   : > { %666 = vmatpush3.bf16.xpose.msra.mxu0 %v329_v6  ;;  %681 = vmatprep.mubr.bf16.mxu0 %v323_v9  ;;  %p392_p12 = scmp.eq.s32.totalorder %s386_s20, 1  ;;  %p387_p10 = scmp.eq.s32.totalorder %s386_s20, 0 }
  0x55   : > { %667 = vmatprep.subr.bf16.mxu0 %v330_v7 }
  0x56   : > { %s393_s21 = scalar_select %p392_p12, 1, 0 }
  0x57   : > { %s416_s22 = scalar_select %p387_p10, 1, 0 }
  0x58   : > { %v394_v21 = vstv %s393_s21 }
  0x59   : > { %vm1074_vm0 = vcmp.eq.s32.totalorder %v394_v21, 1  ;;  %v417_v31 = vstv %s416_s22 }
  0x5a   : > { %vm1094_vm1 = vcmp.eq.s32.totalorder %v417_v31, 1  ;;  %v442_v50 = vsel %vm1074_vm0, %v440_v46, %v441_v47 }
  0x5b   : > { %v443_v52 = vsel %vm1094_vm1, %v439_v49, %v442_v50 }
  0x5c   : > { %668 = vmatpush3.bf16.xpose.msra.mxu0 %v330_v7  ;;  %v475_v53 = vrot.slane %v443_v52, %v474_v51 }
  0x5d   : > { %669 = vmatprep.subr.bf16.mxu0 %v331_v11 }
  0x64   : > { %670 = vmatpush3.bf16.xpose.msra.mxu0 %v331_v11  ;;  %v650_v11 = vld [vmem:[%s1177_s4 + $0x3] ss:$0 sm:$0xff] (!%p649_p11) }
  0x65   : > { %671 = vmatprep.subr.bf16.mxu0 %v332_v12 }
  0x6c   : > { %672 = vmatpush3.bf16.xpose.msra.mxu0 %v332_v12 }
  0x6d   : > { %673 = vmatprep.subr.bf16.mxu0 %v333_v14 }
  0x74   : > { %674 = vmatpush3.bf16.xpose.msra.mxu0 %v333_v14 }
  0x75   : > { %675 = vmatprep.subr.bf16.mxu0 %v334_v15 }
  0x7c   : > { %676 = vmatpush3.bf16.xpose.msra.mxu0 %v334_v15 }
  0x7d   : > { %677 = vmatprep.subr.bf16.mxu0 %v335_v17 }
  0x84   : > { %678 = vmatpush3.bf16.xpose.msra.mxu0 %v335_v17 }
  0x85   : > { %679 = vmatprep.subr.bf16.mxu0 %v336_v18 }
  0x8c   : > { %680 = vmatpush3.bf16.xpose.msra.mxu0 %v336_v18 }
  0x93   : > { %682 = vmatmul.mubr.bf16.vlgmr.msra.gmra.mrb[0].mxu0 %v324_v19 }
  0xc1   : > { %v401_v23 = vpop.permute.xlu0 %400  ;;  %v405_v24 = vpop.permute.xlu1 %404 }
  0xc2   : > { %v412_v25 = vsel %vm1074_vm0, %v1044_v1, %v401_v23  ;;  %v414_v26 = vsel %vm1074_vm0, %v1049_v2, %v405_v24 }
  0xc3   : > { %423 = vrot.lane.b32.xlu0 %v412_v25, %s890_s11 }
  0xc5   : > { %v403_v27 = vpop.permute.xlu0 %402  ;;  %v407_v28 = vpop.permute.xlu1 %406 }
  0xc6   : > { %v413_v29 = vsel %vm1074_vm0, %v1059_v4, %v403_v27  ;;  %v415_v30 = vsel %vm1074_vm0, %v1064_v5, %v407_v28 }
  0xc7   : > { %425 = vrot.lane.b32.xlu1 %v413_v29, %s890_s11  ;;  %427 = vrot.lane.b32.xlu0 %v414_v26, %s890_s11 }
  0xcb   : > { %429 = vrot.lane.b32.xlu1 %v415_v30, %s890_s11 }
 0x135   : > { %v424_v33 = vpop.permute.xlu0 %423 }
 0x136   : > { %v435_v34 = vsel %vm1094_vm1, %v1044_v1, %v424_v33 }
 0x137   : > { %450 = vperm.xlu0 %756, %v435_v34  }
 0x139   : > { %v426_v35 = vpop.permute.xlu1 %425  ;;  %v428_v37 = vpop.permute.xlu0 %427 }
 0x13a   : > { %v436_v36 = vsel %vm1094_vm1, %v1059_v4, %v426_v35  ;;  %v437_v39 = vsel %vm1094_vm1, %v1049_v2, %v428_v37  ;;  %v446_v4 = vld [vmem:[#allocation2 + $0x10] sm:$0xff] }
 0x13b   : > { %455 = vperm.xlu1 %757, %v436_v36  }
 0x13d   : > { %v430_v38 = vpop.permute.xlu1 %429 }
 0x13e   : > { %v438_v40 = vsel %vm1094_vm1, %v1064_v5, %v430_v38  ;;  %v447_v5 = vld [vmem:[#allocation2 + $0x18] sm:$0xff] }
 0x13f   : > { %460 = vperm.xlu1 %757, %v437_v39   ;;  %465 = vperm.xlu0 %756, %v438_v40  }
 0x166   : > { %v683_v41 = vpop.f32.mrb[0].mxu0 }
 0x167   : > { %v371_v42 = vpop.f32.mrb[1].mxu0 }
 0x168   : > { %v684_v43 = vpop.f32.mrb[2].mxu0 }
 0x169   : > { %v374_v44 = vpop.f32.mrb[3].mxu0 }
 0x1b6   : > { %v451_v54 = vpop.permute.xlu0 %450 }
 0x1b7   : > { %v468_v55 = vmul.f32 %v451_v54, %v371_v42 }
 0x1b9   : > { %v476_v57 = vmul.f32 %v475_v53, %v468_v55 }
 0x1ba   : > { %v456_v58 = vpop.permute.xlu1 %455 }
 0x1bb   : > { %v480_v59 = vadd.f32 %v476_v57, %v444_v56  ;;  %v469_v60 = vmul.f32 %v456_v58, %v374_v44 }
 0x1bd   : > { %484 = vst [vmem:[#allocation2] sm:$0xff] %v480_v59  ;;  %v477_v62 = vmul.f32 %v475_v53, %v469_v60 }
 0x1be   : > { %v461_v63 = vpop.permute.xlu1 %460  ;;  %v466_v0 = vpop.permute.xlu0 %465 }
 0x1bf   : > { %v481_v1 = vadd.f32 %v477_v62, %v445_v61  ;;  %v470_v2 = vmul.f32 %v683_v41, %v461_v63  ;;  %v471_v3 = vmul.f32 %v684_v43, %v466_v0  ;;  %491 = sbr.rel (%p649_p11) target bundleno = 464 (0x1d0), region = 48 }
 0x1c1   : > { %485 = vst [vmem:[#allocation2 + $0x8] sm:$0xff] %v481_v1  ;;  %v478_v6 = vmul.f32 %v475_v53, %v470_v2  ;;  %v479_v7 = vmul.f32 %v475_v53, %v471_v3 }
 0x1c3   : > { %v482_v8 = vadd.f32 %v478_v6, %v446_v4  ;;  %v483_v9 = vadd.f32 %v479_v7, %v447_v5 }
 0x1c4   : > { %v492_v10 = vld [vmem:[#allocation2] sm:$0xff] (!%p649_p11) }
 0x1c5   : > { %486 = vst [vmem:[#allocation2 + $0x10] sm:$0xff] %v482_v8  ;;  %487 = vst [vmem:[#allocation2 + $0x18] sm:$0xff] %v483_v9  ;;  %v501_v13 = vadd.f32 (!%p649_p11), %v650_v11, %v492_v10 }
 0x1c7   : > { %505 = vst [vmem:[#allocation8] sm:$0xff] %v501_v13 }
 0x1c8   : > { %v493_v12 = vld [vmem:[#allocation2 + $0x8] sm:$0xff] }
 0x1c9   : > { %v502_v14 = vadd.f32 %v650_v11, %v493_v12 }
 0x1cb   : > { %506 = vst [vmem:[#allocation8 + $0x8] sm:$0xff] %v502_v14 }
 0x1cc   : > { %v494_v15 = vld [vmem:[#allocation2 + $0x10] sm:$0xff]  ;;  %v495_v16 = vld [vmem:[#allocation2 + $0x18] sm:$0xff] }
 0x1cd   : > { %v503_v17 = vadd.f32 %v650_v11, %v494_v15  ;;  %v504_v18 = vadd.f32 %v650_v11, %v495_v16 }
 0x1cf   : > { %507 = vst [vmem:[#allocation8 + $0x10] sm:$0xff] %v503_v17  ;;  %508 = vst [vmem:[#allocation8 + $0x18] sm:$0xff] %v504_v18 }
 0x1d0 PF: > { %p1129_p13 = scmp.eq.s32.totalorder %s638_s28, 2  ;;  %s892_s7 = smov [#allocation8]  }
 0x1d1   : > { %s519_s10 = sshll.u32 %s892_s7, 4  ;;  %s520_s10 = int_to_ptr.vmem [resolvable:$true] %s519_s10 }
 0x1d2   : > { %s800_s11 = scalar_lea.vmem %s520_s10, 512  ;;  %p807_p7 = scmp.lt.s32.totalorder %s520_s10, %s520_s10 }
 0x1d3   : > { %p801_p2 = scmp.ne.s32.totalorder %s520_s10, %s800_s11  ;;  %p808_p8 = scmp.lt.s32.totalorder %s800_s11, %s800_s11 }
 0x1d5   : > { %p802_p4 = pnand %p801_p2, %p1129_p13  ;;  %p809_p3 = por %p808_p8, %p807_p7 }
 0x1d7   : > { %p803_p6 = pneg %p802_p4 }
 0x1d9   : > { %p810_p5 = pnand %p809_p3, %p803_p6 }
 0x1db   : > { %813 = shalt.err (!%p810_p5)
}
 0x1dc   : > { %s814_s28 = scalar_lea.hbm %s1178_s5, 512 }
 0x1dd   : > { %p815_p9 = scmp.ne.s32.totalorder %s1178_s5, %s814_s28  ;;  %p820_p12 = scmp.lt.u32.totalorder %s814_s28, %s1178_s5 }
 0x1df   : > { %p816_p1 = pnand %p815_p9, %p1129_p13 }
 0x1e1   : > { %p817_p0 = pneg %p816_p1 }
 0x1e3   : > { %p822_p10 = pnand %p820_p12, %p817_p0 }
 0x1e5   : > { %825 = shalt.err (!%p822_p10)
}
 0x1e6   : > { %s893_s22 = smov 128   ;;  %s894_s23 = smov 8  }
 0x1e7   : > { %688 = dma.vmem_to_hbm [thread:$0]  (%p1129_p13), %s520_s10, 512, %s1178_s5, [#allocation7], %s893_s22, %s893_s22, %s894_s23  }
 0x1e8   : > { %857 = dma.done.wait (%p1129_p13), [#allocation7], 512  }
 0x1e9   : > { %859 = vsyncadd (%p1129_p13), [#allocation7], 4294966784 }
 0x1ea PF: > { %s25_s27 = sadd.s32 1, %s882_s27   ;;  %s1188_s23 = smov %s866_s24 }
 0x1eb   : > { %p22_p11 = scmp.ge.s32.totalorder %s25_s27, 5   ;;  %s1189_s24 = smov %s870_s0 }
 0x1ec   : > { %s1190_s0 = smov %s979_s9  ;;  %s1191_s25 = smov %s878_s26 }
 0x1ed   : > { %s1192_s26 = smov %s1194_s29  ;;  %24 = sbr.rel (!%p22_p11) target bundleno = 20 (0x14), region = 91 }
 0x1f4   :  { %535 = vsyncpa [#allocation6], 1 }
 0x1f5   :  { %537 = vsyncpa [#allocation6 + $0x1], 1 }
 0x1f6   :  { %538 = vsyncpa [#allocation7], 1 }
 0x1f7   :  { %540 = vsyncpa [#allocation7 + $0x1], 1 }

</bundles_post_ra>
